<compile_context>
chip_gen: v7x
topology: tpu7x:2x2x1
jax: 0.10.0
libtpu: 0.0.40
codegen_flags: <defaults>
</compile_context>

<pallas_src>
import functools

import jax
import jax.numpy as jnp
from jax.experimental import pallas as pl
from jax.experimental.pallas import tpu as pltpu

_LANE = 128
_SUBLANE = 8


def _round_up(x, m):
    return ((x + m - 1) // m) * m


def _conv_matmul_kernel(p_ref, w_ref, b_ref, o_ref, acc_ref):
    """One (tm, tn) output tile; grid axis 2 is the reduction over Kd."""
    k = pl.program_id(2)

    @pl.when(k == 0)
    def _init():
        acc_ref[...] = jnp.zeros_like(acc_ref)

    acc_ref[...] += jnp.dot(p_ref[...], w_ref[...],
                            preferred_element_type=jnp.float32)

    @pl.when(k == pl.num_programs(2) - 1)
    def _finalize():
        # Bias is a single (1, tn) f32 row, added once in the epilogue only.
        o_ref[...] = (acc_ref[...] + b_ref[...]).astype(o_ref.dtype)


@functools.partial(
    jax.jit,
    static_argnames=("stride", "padding", "dilation", "compute_dtype",
                     "tm_target", "tn_target", "tk_target"),
)
def conv_forward(x, weight, bias, *, stride=1, padding=0, dilation=1,
                 compute_dtype=jnp.bfloat16,
                 tm_target=256, tn_target=256, tk_target=512):
    """Equivalent of Conv.forward.

    x:      (B, T, C_in)
    weight: (C_out, C_in, K)   -- PyTorch Conv1d weight layout
    bias:   (C_out,)
    returns (B, T_out, C_out)
    """
    B, T, Cin = x.shape
    Cout, Cin_w, K = weight.shape
    assert Cin == Cin_w

    # ---- im2col glue (plain JAX: pad + strided slices) -------------------
    # TODO(synk): for stride==1 the K taps could be fused into the kernel via
    # element-offset BlockSpecs on the time axis (saves the Kx-inflated patch
    # round trip through HBM); kept in the wrapper here for robustness.
    x_pad = jnp.pad(x, ((0, 0), (padding, padding), (0, 0)))
    T_pad = T + 2 * padding
    T_out = (T_pad - dilation * (K - 1) - 1) // stride + 1

    if K == 1 and stride == 1:
        patches = x_pad[:, :T_out, :]                       # (B, T_out, Cin)
    else:
        cols = []
        for k in range(K):
            start = k * dilation
            stop = start + (T_out - 1) * stride + 1
            cols.append(x_pad[:, start:stop:stride, :])     # (B, T_out, Cin)
        patches = jnp.concatenate(cols, axis=-1)            # (B, T_out, K*Cin)

    M = B * T_out
    Kd = Cin * K
    p = patches.reshape(M, Kd)                              # k-major, ci-fast
    # w_flat[k*Cin + ci, co] = weight[co, ci, k]  (matches patch ordering)
    w_flat = jnp.transpose(weight, (2, 1, 0)).reshape(Kd, Cout)
    b_row = bias.reshape(1, Cout).astype(jnp.float32)

    # ---- lane/sublane-aligned tiles; zero-pad arrays to tile multiples ----
    Kd_p = _round_up(Kd, _LANE)
    tk = min(tk_target, Kd_p)
    Kd_p = _round_up(Kd_p, tk)

    N_p = _round_up(Cout, _LANE)
    tn = min(tn_target, N_p)
    N_p = _round_up(N_p, tn)

    M_p = _round_up(M, _SUBLANE)
    tm = min(tm_target, M_p)
    M_p = _round_up(M_p, tm)

    cdt = jnp.dtype(compute_dtype)
    p_pad = jnp.zeros((M_p, Kd_p), cdt).at[:M, :Kd].set(p.astype(cdt))
    w_pad = jnp.zeros((Kd_p, N_p), cdt).at[:Kd, :Cout].set(w_flat.astype(cdt))
    b_pad = jnp.zeros((1, N_p), jnp.float32).at[:, :Cout].set(b_row)

    grid = (M_p // tm, N_p // tn, Kd_p // tk)

    out_itemsize = jnp.dtype(x.dtype).itemsize
    cost = pl.CostEstimate(
        flops=2 * M_p * Kd_p * N_p,
        transcendentals=0,
        bytes_accessed=(p_pad.size * p_pad.dtype.itemsize
                        + w_pad.size * w_pad.dtype.itemsize
                        + b_pad.size * b_pad.dtype.itemsize
                        + M_p * N_p * out_itemsize),
    )

    out = pl.pallas_call(
        _conv_matmul_kernel,
        out_shape=jax.ShapeDtypeStruct((M_p, N_p), x.dtype),
        grid=grid,
        in_specs=[
            pl.BlockSpec((tm, tk), lambda i, j, k: (i, k)),   # patches tile
            pl.BlockSpec((tk, tn), lambda i, j, k: (k, j)),   # weight tile
            pl.BlockSpec((1, tn), lambda i, j, k: (0, j)),    # bias row (N tile)
        ],
        out_specs=pl.BlockSpec((tm, tn), lambda i, j, k: (i, j)),
        scratch_shapes=[pltpu.VMEM((tm, tn), jnp.float32)],
        compiler_params=pltpu.CompilerParams(
            dimension_semantics=("parallel", "parallel", "arbitrary")),
        cost_estimate=cost,
    )(p_pad, w_pad, b_pad)

    return out[:M, :Cout].reshape(B, T_out, Cout)


def _reference_conv(x, weight, bias, *, stride=1, padding=0, dilation=1):
    # Pure-JAX reference following PyTorch Conv1d (NCH layout internally).
    y = jax.lax.conv_general_dilated(
        jnp.transpose(x, (0, 2, 1)),          # (B, C_in, T)
        weight,                                # (C_out, C_in, K)
        window_strides=(stride,),
        padding=[(padding, padding)],
        rhs_dilation=(dilation,),
        dimension_numbers=("NCH", "OIH", "NCH"),
        precision=jax.lax.Precision.HIGHEST,
    )
    y = jnp.transpose(y, (0, 2, 1)) + bias[None, None, :]
    return y


if __name__ == "__main__":
    key = jax.random.PRNGKey(0)
    k_x, k_w1, k_b1, k_w2, k_b2 = jax.random.split(key, 5)

    # Small shapes consistent with the module: (batch, seq, channels).
    B, T, Cin, Cout = 2, 16, 4, 8
    x = jax.random.normal(k_x, (B, T, Cin), dtype=jnp.float32)

    # --- Config 1: module defaults (kernel_size=1, stride=1, padding=0) ---
    K1 = 1
    w1 = jax.random.normal(k_w1, (Cout, Cin, K1), jnp.float32) / jnp.sqrt(Cin * K1)
    b1 = jax.random.normal(k_b1, (Cout,), jnp.float32) * 0.1

    out_bf16 = jax.block_until_ready(conv_forward(x, w1, b1))
    out_f32 = jax.block_until_ready(
        conv_forward(x, w1, b1, compute_dtype=jnp.float32))
    ref1 = _reference_conv(x, w1, b1)

    assert out_bf16.shape == (B, T, Cout), out_bf16.shape
    assert jnp.allclose(out_f32, ref1, atol=1e-3, rtol=1e-3), \
        float(jnp.max(jnp.abs(out_f32 - ref1)))
    assert jnp.allclose(out_bf16, ref1, atol=5e-2, rtol=5e-2), \
        float(jnp.max(jnp.abs(out_bf16 - ref1)))

    # --- Config 2: kernel_size=3, padding=1 (exercises the im2col path) ---
    K2 = 3
    w2 = jax.random.normal(k_w2, (Cout, Cin, K2), jnp.float32) / jnp.sqrt(Cin * K2)
    b2 = jax.random.normal(k_b2, (Cout,), jnp.float32) * 0.1

    out2 = jax.block_until_ready(
        conv_forward(x, w2, b2, padding=1, compute_dtype=jnp.float32))
    ref2 = _reference_conv(x, w2, b2, padding=1)
    assert out2.shape == ref2.shape, (out2.shape, ref2.shape)
    assert jnp.allclose(out2, ref2, atol=1e-3, rtol=1e-3), \
        float(jnp.max(jnp.abs(out2 - ref2)))

    print("KERNEL_OK")
</pallas_src>

<mosaic_0001>
module attributes {stable_mosaic.version = 11 : i64} {
  func.func @_conv_matmul_kernel(%arg0: i32, %arg1: i32, %arg2: i32, %arg3: memref<32x128xbf16, #tpu.memory_space<vmem>>, %arg4: memref<128x128xbf16, #tpu.memory_space<vmem>>, %arg5: memref<1x128xf32, #tpu.memory_space<vmem>>, %arg6: memref<32x128xf32, #tpu.memory_space<vmem>>, %arg7: memref<32x128xf32, #tpu.memory_space<vmem>>) attributes {dimension_semantics = [#tpu.dimension_semantics<parallel>, #tpu.dimension_semantics<parallel>, #tpu.dimension_semantics<arbitrary>], iteration_bounds = array<i64: 1, 1, 1>, scalar_prefetch = 0 : i64, scratch_operands = 1 : i64, tpu.core_type = #tpu.core_type<tc>, window_params = [{transform_indices = @transform_0, window_bounds = array<i64: 32, 128>}, {transform_indices = @transform_1, window_bounds = array<i64: 128, 128>}, {transform_indices = @transform_2, window_bounds = array<i64: 1, 128>}, {transform_indices = @transform_3, window_bounds = array<i64: 32, 128>}]} {
    %c0_i32 = arith.constant 0 : i32
    %0 = arith.cmpi eq, %arg2, %c0_i32 : i32
    %1 = arith.extui %0 : i1 to i32
    %c0_i32_0 = arith.constant 0 : i32
    %2 = arith.cmpi ne, %1, %c0_i32_0 : i32
    scf.if %2 {
      %cst_10 = arith.constant 0.000000e+00 : f32
      %12 = vector.broadcast %cst_10 : f32 to vector<32x128xf32>
      %c0_11 = arith.constant 0 : index
      %c0_12 = arith.constant 0 : index
      %13 = vector.load %arg7[%c0_11, %c0_12] : memref<32x128xf32, #tpu.memory_space<vmem>>, vector<32x128xf32>
      tpu.vector_store %arg7[%c0_11, %c0_12], %12 {strides = array<i32>} : memref<32x128xf32, #tpu.memory_space<vmem>>, vector<32x128xf32>,
    } else {
    }
    %c0 = arith.constant 0 : index
    %c0_1 = arith.constant 0 : index
    %3 = vector.load %arg7[%c0, %c0_1] : memref<32x128xf32, #tpu.memory_space<vmem>>, vector<32x128xf32>
    %c0_2 = arith.constant 0 : index
    %c0_3 = arith.constant 0 : index
    %4 = vector.load %arg3[%c0_2, %c0_3] : memref<32x128xbf16, #tpu.memory_space<vmem>>, vector<32x128xbf16>
    %c0_4 = arith.constant 0 : index
    %c0_5 = arith.constant 0 : index
    %5 = vector.load %arg4[%c0_4, %c0_5] : memref<128x128xbf16, #tpu.memory_space<vmem>>, vector<128x128xbf16>
    %cst = arith.constant dense<0.000000e+00> : vector<32x128xf32>
    %6 = tpu.matmul %4, %5, %cst {dimension_numbers = #tpu.dot_dimension_numbers<[1], [0], [0], [1], [0, 0, 1, 1], [], []>} : vector<32x128xbf16>, vector<128x128xbf16>, vector<32x128xf32> -> vector<32x128xf32>
    %7 = arith.addf %3, %6 : vector<32x128xf32>
    %c0_6 = arith.constant 0 : index
    %c0_7 = arith.constant 0 : index
    %8 = vector.load %arg7[%c0_6, %c0_7] : memref<32x128xf32, #tpu.memory_space<vmem>>, vector<32x128xf32>
    tpu.vector_store %arg7[%c0_6, %c0_7], %7 {strides = array<i32>} : memref<32x128xf32, #tpu.memory_space<vmem>>, vector<32x128xf32>,
    %c0_i32_8 = arith.constant 0 : i32
    %9 = arith.cmpi eq, %arg2, %c0_i32_8 : i32
    %10 = arith.extui %9 : i1 to i32
    %c0_i32_9 = arith.constant 0 : i32
    %11 = arith.cmpi ne, %10, %c0_i32_9 : i32
    scf.if %11 {
      %c0_10 = arith.constant 0 : index
      %c0_11 = arith.constant 0 : index
      %12 = vector.load %arg7[%c0_10, %c0_11] : memref<32x128xf32, #tpu.memory_space<vmem>>, vector<32x128xf32>
      %c0_12 = arith.constant 0 : index
      %c0_13 = arith.constant 0 : index
      %13 = vector.load %arg5[%c0_12, %c0_13] : memref<1x128xf32, #tpu.memory_space<vmem>>, vector<1x128xf32>
      %14 = vector.broadcast %13 : vector<1x128xf32> to vector<32x128xf32>
      %15 = arith.addf %12, %14 : vector<32x128xf32>
      %c0_14 = arith.constant 0 : index
      %c0_15 = arith.constant 0 : index
      %16 = vector.load %arg6[%c0_14, %c0_15] : memref<32x128xf32, #tpu.memory_space<vmem>>, vector<32x128xf32>
      tpu.vector_store %arg6[%c0_14, %c0_15], %15 {strides = array<i32>} : memref<32x128xf32, #tpu.memory_space<vmem>>, vector<32x128xf32>,
    } else {
    }
    return
  }
  func.func @transform_0(%arg0: i32, %arg1: i32, %arg2: i32) -> (i32, i32) {
    %c0_i32 = arith.constant 0 : i32
    return %arg0, %arg2 : i32, i32
  }
  func.func @transform_1(%arg0: i32, %arg1: i32, %arg2: i32) -> (i32, i32) {
    %c0_i32 = arith.constant 0 : i32
    return %arg2, %arg1 : i32, i32
  }
  func.func @transform_2(%arg0: i32, %arg1: i32, %arg2: i32) -> (i32, i32) {
    %c0_i32 = arith.constant 0 : i32
    %c0_i32_0 = arith.constant 0 : i32
    return %c0_i32, %arg1 : i32, i32
  }
  func.func @transform_3(%arg0: i32, %arg1: i32, %arg2: i32) -> (i32, i32) {
    %c0_i32 = arith.constant 0 : i32
    return %arg0, %arg1 : i32, i32
  }
}

</mosaic_0001>

<bundles_post_ra>
// kernel: conv_forward.1
= control target key start
LH: loop header
LB: loop body
LE: loop exit
PB: predicated region body
PF: predicated region fallthrough
CT: control target
= control target key end

     0   :  { %s306_s1 = inlined_call_operand.vmem [shape: bf16[128,128], index: 1, kind: input, shape index: {}]   ;;  %s307_s0 = inlined_call_operand.vmem [shape: bf16[32,128], index: 0, kind: input, shape index: {}]   ;;  %s308_s2 = inlined_call_operand.vmem [shape: f32[1,128], index: 2, kind: input, shape index: {}]   ;;  %s309_s3 = inlined_call_operand.vmem [shape: f32[32,128], index: 3, kind: output, shape index: {}]  }
   0x1   :  { %v231_v0 = vld [vmem:[%s306_s1] sm:$0xff]   ;;  %v232_v1 = vld [vmem:[%s306_s1 + $0x8] sm:$0xff]   ;;  %v233_v2 = vld [vmem:[%s306_s1 + $0x10] sm:$0xff]  }
   0x2   :  { %211 = vmatprep.subr.bf16.mxu0 %v231_v0  ;;  %v234_v3 = vld [vmem:[%s306_s1 + $0x18] sm:$0xff]   ;;  %v239_v4 = vld [vmem:[%s307_s0] sm:$0xff]   ;;  %v236_v6 = vld [vmem:[%s306_s1 + $0x28] sm:$0xff]  }
   0x3   :  { %212 = vmatpush3.bf16.msra.mxu0 %v231_v0  ;;  %227 = vmatprep.mubr.bf16.mxu0 %v239_v4  ;;  %v235_v5 = vld [vmem:[%s306_s1 + $0x20] sm:$0xff]   ;;  %v237_v7 = vld [vmem:[%s306_s1 + $0x30] sm:$0xff]   ;;  %v238_v8 = vld [vmem:[%s306_s1 + $0x38] sm:$0xff]  }
   0x4   :  { %213 = vmatprep.subr.bf16.mxu0 %v232_v1  ;;  %v240_v9 = vld [vmem:[%s307_s0 + $0x8] sm:$0xff]   ;;  %v200_v10 = vld [vmem:[%s308_s2] ss:$0 sm:$0xff] }
   0x7   :  { %214 = vmatpush3.bf16.msra.mxu0 %v232_v1 }
   0x8   :  { %215 = vmatprep.subr.bf16.mxu0 %v233_v2 }
   0xb   :  { %216 = vmatpush3.bf16.msra.mxu0 %v233_v2 }
   0xc   :  { %217 = vmatprep.subr.bf16.mxu0 %v234_v3 }
   0xf   :  { %218 = vmatpush3.bf16.msra.mxu0 %v234_v3 }
  0x10   :  { %219 = vmatprep.subr.bf16.mxu0 %v235_v5 }
  0x13   :  { %220 = vmatpush3.bf16.msra.mxu0 %v235_v5 }
  0x14   :  { %221 = vmatprep.subr.bf16.mxu0 %v236_v6 }
  0x17   :  { %222 = vmatpush3.bf16.msra.mxu0 %v236_v6 }
  0x18   :  { %223 = vmatprep.subr.bf16.mxu0 %v237_v7 }
  0x1b   :  { %224 = vmatpush3.bf16.msra.mxu0 %v237_v7 }
  0x1c   :  { %225 = vmatprep.subr.bf16.mxu0 %v238_v8 }
  0x1f   :  { %226 = vmatpush3.bf16.msra.mxu0 %v238_v8 }
  0x22   :  { %228 = vmatmul.mubr.bf16.vlgmr.msra.gmra.mrb[0].mxu0 %v240_v9 }
  0xf5   :  { %v229_v11 = vpop.f32.mrb[0].mxu0 }
  0xf6   :  { %v180_v12 = vadd.f32 %v229_v11, %v200_v10  ;;  %v141_v13 = vpop.f32.mrb[1].mxu0 }
  0xf7   :  { %v178_v14 = vadd.f32 %v200_v10, %v141_v13  ;;  %v230_v15 = vpop.f32.mrb[2].mxu0 }
  0xf8   :  { %184 = vst [vmem:[%s309_s3 + $0x10] sm:$0xff] %v180_v12  ;;  %v181_v16 = vadd.f32 %v230_v15, %v200_v10  ;;  %v144_v17 = vpop.f32.mrb[3].mxu0 }
  0xf9   :  { %182 = vst [vmem:[%s309_s3] sm:$0xff] %v178_v14  ;;  %v179_v18 = vadd.f32 %v200_v10, %v144_v17 }
  0xfa   :  { %185 = vst [vmem:[%s309_s3 + $0x18] sm:$0xff] %v181_v16 }
  0xfb   :  { %183 = vst [vmem:[%s309_s3 + $0x8] sm:$0xff] %v179_v18 }

</bundles_post_ra>
